<compile_context>
chip_gen: v7x
topology: tpu7x:2x2x1
jax: 0.10.0
libtpu: 0.0.40
codegen_flags: <defaults>
</compile_context>

<pallas_src>
import functools
import math

import jax
import jax.numpy as jnp
from jax.experimental import pallas as pl
from jax.experimental.pallas import tpu as pltpu

# ---- small synthetic config (stand-in for distilroberta-base) ----
BATCH = 2
SEQ = 8
HIDDEN = 32          # distilroberta: 768
HEADS = 4            # distilroberta: 12
HEAD_DIM = HIDDEN // HEADS
FFN = 64             # distilroberta: 3072
LAYERS = 2           # distilroberta: 6
VOCAB = 50
OUT_DIM = 1
LN_EPS = 1e-5
BN_EPS = 1e-5        # torch.nn.BatchNorm1d(eps=1e-05)
L2_EPS = 1e-12       # F.normalize default eps

_TRANS_B = (((1,), (1,)), ((), ()))   # A @ B.T contraction for the MXU


def _layernorm(x, g, b):
    mu = jnp.mean(x, axis=-1, keepdims=True)
    var = jnp.mean(jnp.square(x - mu), axis=-1, keepdims=True)
    return (x - mu) * jax.lax.rsqrt(var + LN_EPS) * g + b


# ---------------- single fused whole-model kernel ----------------
def _fused_model_kernel(emb_ref, mask_ref, embln_ref, wqkv_ref, bqkv_ref,
                        wo_ref, w1_ref, b1_ref, w2_ref, bo2_ref, lns_ref,
                        head_ref, fcb_ref, out_ref, x_scr, *, heads, scale):
    layer = pl.program_id(1)
    n_layers = pl.num_programs(1)
    S, D = x_scr.shape
    dh = D // heads

    # --- layer 0: embedding LayerNorm (no zero-residual round trip) ---
    @pl.when(layer == 0)
    def _():
        x_scr[...] = _layernorm(emb_ref[...], embln_ref[0:1, :], embln_ref[1:2, :])

    x = x_scr[...]                                   # (S, D) f32, resident in VMEM
    xb = x.astype(jnp.bfloat16)

    # --- fused QKV projection: one [S,D] x [D,3D] bf16 matmul ---
    qkv = (jnp.dot(xb, wqkv_ref[...], preferred_element_type=jnp.float32)
           + bqkv_ref[...])                          # (S, 3D) f32
    qkv_b = qkv.astype(jnp.bfloat16)
    mask = mask_ref[...]                             # (1, S) additive key mask

    # --- multi-head attention: all heads inside one grid step ---
    ctx_heads = []
    for hh in range(heads):
        qh = qkv_b[:, hh * dh:(hh + 1) * dh]                       # (S, dh)
        kh = qkv_b[:, D + hh * dh:D + (hh + 1) * dh]               # (S, dh)
        vh = qkv_b[:, 2 * D + hh * dh:2 * D + (hh + 1) * dh]       # (S, dh)
        s = jax.lax.dot_general(qh, kh, _TRANS_B,
                                preferred_element_type=jnp.float32) * scale + mask
        s = s - jnp.max(s, axis=-1, keepdims=True)
        p = jnp.exp(s)
        p = p * pl.reciprocal(jnp.sum(p, axis=-1, keepdims=True), approx=True)
        ctx_heads.append(jnp.dot(p.astype(jnp.bfloat16), vh,
                                 preferred_element_type=jnp.float32))
    ctx = jnp.concatenate(ctx_heads, axis=-1)        # (S, D) lane-dense

    # --- output projection + residual + LN1 (bias fused into the LN path) ---
    attn = (jnp.dot(ctx.astype(jnp.bfloat16), wo_ref[...],
                    preferred_element_type=jnp.float32) + bo2_ref[0:1, :])
    x = _layernorm(x + attn, lns_ref[0:1, :], lns_ref[1:2, :])

    # --- FFN + residual + LN2 ---
    hid = (jnp.dot(x.astype(jnp.bfloat16), w1_ref[...],
                   preferred_element_type=jnp.float32) + b1_ref[...])
    # TODO(synk): HF roberta uses exact erf-GELU; tanh approximation used for
    #             guaranteed Mosaic lowering (tiny systematic drift).
    hid = jax.nn.gelu(hid, approximate=True)
    hid = (jnp.dot(hid.astype(jnp.bfloat16), w2_ref[...],
                   preferred_element_type=jnp.float32) + bo2_ref[1:2, :])
    x = _layernorm(x + hid, lns_ref[2:3, :], lns_ref[3:4, :])
    x_scr[...] = x

    # --- last layer: fused pooled head (mean -> L2 norm -> BN -> ReLU -> Linear) ---
    @pl.when(layer == n_layers - 1)
    def _():
        pooled = jnp.sum(x, axis=0, keepdims=True) * (1.0 / S)     # torch.mean(dim=1)
        nrm = jnp.sqrt(jnp.sum(pooled * pooled, axis=-1, keepdims=True))
        pooled = pooled / jnp.maximum(nrm, L2_EPS)                 # F.normalize(dim=-1)
        z = pooled * head_ref[0:1, :] + head_ref[1:2, :]           # folded BN (eval)
        z = jnp.maximum(z, 0.0)                                    # ReLU; Dropout = id
        out_ref[...] = (jnp.sum(z * head_ref[2:3, :], axis=-1, keepdims=True)
                        + fcb_ref[...])                            # Linear(D -> 1)


# ---------------- wrapper ----------------
def fused_forward(emb, mask_bias, p):
    B, S, D = emb.shape
    L, _, F = p["w1"].shape

    def const_spec(shape):
        return pl.BlockSpec(shape, lambda b, l: (0,) * len(shape))

    def per_batch(shape):
        return pl.BlockSpec((None,) + shape, lambda b, l: (b, 0, 0))

    def per_layer(shape):
        return pl.BlockSpec((None,) + shape, lambda b, l: (l, 0, 0))

    kernel = functools.partial(_fused_model_kernel, heads=HEADS,
                               scale=1.0 / math.sqrt(D // HEADS))
    out = pl.pallas_call(
        kernel,
        grid=(B, L),
        in_specs=[
            per_batch((S, D)),            # emb
            per_batch((1, S)),            # mask_bias
            const_spec((2, D)),           # emb LN (gamma, beta)
            per_layer((D, 3 * D)),        # wqkv (bf16)
            per_layer((1, 3 * D)),        # bqkv
            per_layer((D, D)),            # wo (bf16)
            per_layer((D, F)),            # w1 (bf16)
            per_layer((1, F)),            # b1
            per_layer((F, D)),            # w2 (bf16)
            per_layer((2, D)),            # (bo, b2)
            per_layer((4, D)),            # (ln1_g, ln1_b, ln2_g, ln2_b)
            const_spec((3, D)),           # head: (bn_scale, bn_shift, fc_w^T)
            const_spec((1, 1)),           # fc_b
        ],
        out_specs=pl.BlockSpec((None, 1, OUT_DIM), lambda b, l: (b, 0, 0)),
        out_shape=jax.ShapeDtypeStruct((B, 1, OUT_DIM), jnp.float32),
        scratch_shapes=[pltpu.VMEM((S, D), jnp.float32)],
        compiler_params=pltpu.CompilerParams(
            dimension_semantics=("parallel", "arbitrary")),
    )(emb, mask_bias, p["emb_ln"], p["wqkv"], p["bqkv"], p["wo"],
      p["w1"], p["b1"], p["w2"], p["bias_o2"], p["lns"],
      p["head_vecs"], p["fc_b"])
    return out.reshape(B, OUT_DIM)


# ---------------- parameters (deterministic, in-script) ----------------
def init_params(key):
    D, F, L = HIDDEN, FFN, LAYERS
    keys = jax.random.split(key, 3 + L)

    def nrm(k, shape):
        return jax.random.normal(k, shape, jnp.float32) * 0.02

    wqkv, bqkv, wo, w1, b1, w2, bias_o2, lns = [], [], [], [], [], [], [], []
    for i in range(L):
        lk = jax.random.split(keys[2 + i], 6)
        wqkv.append(jnp.concatenate(
            [nrm(lk[0], (D, D)), nrm(lk[1], (D, D)), nrm(lk[2], (D, D))], axis=1))
        bqkv.append(jnp.zeros((1, 3 * D), jnp.float32))
        wo.append(nrm(lk[3], (D, D)))
        w1.append(nrm(lk[4], (D, F)))
        b1.append(jnp.zeros((1, F), jnp.float32))
        w2.append(nrm(lk[5], (F, D)))
        bias_o2.append(jnp.zeros((2, D), jnp.float32))        # rows: bo, b2
        lns.append(jnp.stack([jnp.ones(D), jnp.zeros(D),
                              jnp.ones(D), jnp.zeros(D)]))

    # fc head: BatchNorm1d(D) running stats folded for eval + Linear(D, OUT_DIM)
    bn_g, bn_b = jnp.ones(D), jnp.zeros(D)
    bn_m, bn_v = jnp.zeros(D), jnp.ones(D)
    bn_scale = bn_g * jax.lax.rsqrt(bn_v + BN_EPS)
    bn_shift = bn_b - bn_m * bn_scale
    fc_w = nrm(keys[2 + L], (D, OUT_DIM))

    return {
        "word_emb": nrm(keys[0], (VOCAB, D)),
        "pos_emb": nrm(keys[1], (SEQ, D)),
        "emb_ln": jnp.stack([jnp.ones(D), jnp.zeros(D)]),
        "wqkv": jnp.stack(wqkv).astype(jnp.bfloat16),
        "bqkv": jnp.stack(bqkv),
        "wo": jnp.stack(wo).astype(jnp.bfloat16),
        "w1": jnp.stack(w1).astype(jnp.bfloat16),
        "b1": jnp.stack(b1),
        "w2": jnp.stack(w2).astype(jnp.bfloat16),
        "bias_o2": jnp.stack(bias_o2),
        "lns": jnp.stack(lns),
        "head_vecs": jnp.stack([bn_scale, bn_shift, fc_w[:, 0]]),
        "fc_b": jnp.zeros((1, 1), jnp.float32),
    }


# ---------------- forward (embedding gather is glue, everything else is one kernel) ----------------
def forward(params, input_ids, attention_mask):
    B, S = input_ids.shape
    emb = (params["word_emb"][input_ids]
           + params["pos_emb"][None, :S, :]).astype(jnp.float32)          # (B, S, D)
    mask_bias = ((1.0 - attention_mask.astype(jnp.float32)) * -1e9)[:, None, :]
    return fused_forward(emb, mask_bias, params)


if __name__ == "__main__":
    key = jax.random.PRNGKey(0)
    k_ids, k_params = jax.random.split(key)
    input_ids = jax.random.randint(k_ids, (BATCH, SEQ), 0, VOCAB, dtype=jnp.int32)
    attention_mask = jnp.ones((BATCH, SEQ), jnp.int32).at[1, SEQ - 3:].set(0)

    params = init_params(k_params)
    out = jax.jit(forward)(params, input_ids, attention_mask)
    jax.block_until_ready(out)
    assert out.shape == (BATCH, OUT_DIM) and out.dtype == jnp.float32
    print("KERNEL_OK")
</pallas_src>

<mosaic_0001>
module attributes {stable_mosaic.version = 11 : i64} {
  func.func @_fused_model_kernel(%arg0: i32, %arg1: i32, %arg2: memref<1x8x32xf32, #tpu.memory_space<vmem>>, %arg3: memref<1x1x8xf32, #tpu.memory_space<vmem>>, %arg4: memref<2x32xf32, #tpu.memory_space<vmem>>, %arg5: memref<1x32x96xbf16, #tpu.memory_space<vmem>>, %arg6: memref<1x1x96xf32, #tpu.memory_space<vmem>>, %arg7: memref<1x32x32xbf16, #tpu.memory_space<vmem>>, %arg8: memref<1x32x64xbf16, #tpu.memory_space<vmem>>, %arg9: memref<1x1x64xf32, #tpu.memory_space<vmem>>, %arg10: memref<1x64x32xbf16, #tpu.memory_space<vmem>>, %arg11: memref<1x2x32xf32, #tpu.memory_space<vmem>>, %arg12: memref<1x4x32xf32, #tpu.memory_space<vmem>>, %arg13: memref<3x32xf32, #tpu.memory_space<vmem>>, %arg14: memref<1x1xf32, #tpu.memory_space<vmem>>, %arg15: memref<1x1x1xf32, #tpu.memory_space<vmem>>, %arg16: memref<8x32xf32, #tpu.memory_space<vmem>>) attributes {dimension_semantics = [#tpu.dimension_semantics<parallel>, #tpu.dimension_semantics<arbitrary>], iteration_bounds = array<i64: 2, 2>, scalar_prefetch = 0 : i64, scratch_operands = 1 : i64, tpu.core_type = #tpu.core_type<tc>, window_params = [{transform_indices = @transform_0, window_bounds = array<i64: 1, 8, 32>}, {transform_indices = @transform_1, window_bounds = array<i64: 1, 1, 8>}, {pipeline_mode = #tpu.pipeline_mode<synchronous>, transform_indices = @transform_2, window_bounds = array<i64: 2, 32>}, {transform_indices = @transform_3, window_bounds = array<i64: 1, 32, 96>}, {transform_indices = @transform_4, window_bounds = array<i64: 1, 1, 96>}, {transform_indices = @transform_5, window_bounds = array<i64: 1, 32, 32>}, {transform_indices = @transform_6, window_bounds = array<i64: 1, 32, 64>}, {transform_indices = @transform_7, window_bounds = array<i64: 1, 1, 64>}, {transform_indices = @transform_8, window_bounds = array<i64: 1, 64, 32>}, {transform_indices = @transform_9, window_bounds = array<i64: 1, 2, 32>}, {transform_indices = @transform_10, window_bounds = array<i64: 1, 4, 32>}, {pipeline_mode = #tpu.pipeline_mode<synchronous>, transform_indices = @transform_11, window_bounds = array<i64: 3, 32>}, {pipeline_mode = #tpu.pipeline_mode<synchronous>, transform_indices = @transform_12, window_bounds = array<i64: 1, 1>}, {transform_indices = @transform_13, window_bounds = array<i64: 1, 1, 1>}]} {
    %c0_i32 = arith.constant 0 : i32
    %0 = arith.cmpi eq, %arg1, %c0_i32 : i32
    %1 = arith.extui %0 : i1 to i32
    %c0_i32_0 = arith.constant 0 : i32
    %2 = arith.cmpi ne, %1, %c0_i32_0 : i32
    scf.if %2 {
      %c0_78 = arith.constant 0 : index
      %c0_79 = arith.constant 0 : index
      %c0_80 = arith.constant 0 : index
      %191 = vector.load %arg2[%c0_78, %c0_79, %c0_80] : memref<1x8x32xf32, #tpu.memory_space<vmem>>, vector<1x8x32xf32>
      %192 = vector.shape_cast %191 : vector<1x8x32xf32> to vector<8x32xf32>
      %c0_81 = arith.constant 0 : index
      %c0_82 = arith.constant 0 : index
      %193 = vector.load %arg4[%c0_81, %c0_82] : memref<2x32xf32, #tpu.memory_space<vmem>>, vector<1x32xf32>
      %c1_83 = arith.constant 1 : index
      %c0_84 = arith.constant 0 : index
      %194 = vector.load %arg4[%c1_83, %c0_84] : memref<2x32xf32, #tpu.memory_space<vmem>>, vector<1x32xf32>
      %cst_85 = arith.constant dense<0.000000e+00> : vector<8xf32>
      %195 = vector.multi_reduction <add>, %192, %cst_85 [1] : vector<8x32xf32> to vector<8xf32>
      %196 = vector.shape_cast %195 : vector<8xf32> to vector<8x1xf32>
      %cst_86 = arith.constant 3.200000e+01 : f32
      %197 = vector.broadcast %cst_86 : f32 to vector<8x1xf32>
      %198 = arith.divf %196, %197 : vector<8x1xf32>
      %199 = vector.broadcast %198 : vector<8x1xf32> to vector<8x32xf32>
      %200 = arith.subf %192, %199 : vector<8x32xf32>
      %201 = arith.mulf %200, %200 : vector<8x32xf32>
      %cst_87 = arith.constant dense<0.000000e+00> : vector<8xf32>
      %202 = vector.multi_reduction <add>, %201, %cst_87 [1] : vector<8x32xf32> to vector<8xf32>
      %203 = vector.shape_cast %202 : vector<8xf32> to vector<8x1xf32>
      %cst_88 = arith.constant 3.200000e+01 : f32
      %204 = vector.broadcast %cst_88 : f32 to vector<8x1xf32>
      %205 = arith.divf %203, %204 : vector<8x1xf32>
      %206 = vector.broadcast %198 : vector<8x1xf32> to vector<8x32xf32>
      %207 = arith.subf %192, %206 : vector<8x32xf32>
      %cst_89 = arith.constant 9.99999974E-6 : f32
      %208 = vector.broadcast %cst_89 : f32 to vector<8x1xf32>
      %209 = arith.addf %205, %208 : vector<8x1xf32>
      %210 = math.rsqrt %209 : vector<8x1xf32>
      %211 = vector.broadcast %210 : vector<8x1xf32> to vector<8x32xf32>
      %212 = arith.mulf %207, %211 : vector<8x32xf32>
      %213 = vector.broadcast %193 : vector<1x32xf32> to vector<8x32xf32>
      %214 = arith.mulf %212, %213 : vector<8x32xf32>
      %215 = vector.broadcast %194 : vector<1x32xf32> to vector<8x32xf32>
      %216 = arith.addf %214, %215 : vector<8x32xf32>
      %c0_90 = arith.constant 0 : index
      %c0_91 = arith.constant 0 : index
      %217 = vector.load %arg16[%c0_90, %c0_91] : memref<8x32xf32, #tpu.memory_space<vmem>>, vector<8x32xf32>
      tpu.vector_store %arg16[%c0_90, %c0_91], %216 {strides = array<i32>} : memref<8x32xf32, #tpu.memory_space<vmem>>, vector<8x32xf32>,
    } else {
    }
    %c0 = arith.constant 0 : index
    %c0_1 = arith.constant 0 : index
    %3 = vector.load %arg16[%c0, %c0_1] : memref<8x32xf32, #tpu.memory_space<vmem>>, vector<8x32xf32>
    %4 = arith.truncf %3 : vector<8x32xf32> to vector<8x32xbf16>
    %c0_2 = arith.constant 0 : index
    %c0_3 = arith.constant 0 : index
    %c0_4 = arith.constant 0 : index
    %5 = vector.load %arg5[%c0_2, %c0_3, %c0_4] : memref<1x32x96xbf16, #tpu.memory_space<vmem>>, vector<1x32x96xbf16>
    %6 = vector.shape_cast %5 : vector<1x32x96xbf16> to vector<32x96xbf16>
    %cst = arith.constant dense<0.000000e+00> : vector<8x96xf32>
    %7 = tpu.matmul %4, %6, %cst {dimension_numbers = #tpu.dot_dimension_numbers<[1], [0], [0], [1], [0, 0, 1, 1], [], []>} : vector<8x32xbf16>, vector<32x96xbf16>, vector<8x96xf32> -> vector<8x96xf32>
    %c0_5 = arith.constant 0 : index
    %c0_6 = arith.constant 0 : index
    %c0_7 = arith.constant 0 : index
    %8 = vector.load %arg6[%c0_5, %c0_6, %c0_7] : memref<1x1x96xf32, #tpu.memory_space<vmem>>, vector<1x1x96xf32>
    %9 = vector.shape_cast %8 : vector<1x1x96xf32> to vector<1x96xf32>
    %10 = vector.broadcast %9 : vector<1x96xf32> to vector<8x96xf32>
    %11 = arith.addf %7, %10 : vector<8x96xf32>
    %12 = arith.truncf %11 : vector<8x96xf32> to vector<8x96xbf16>
    %c0_8 = arith.constant 0 : index
    %c0_9 = arith.constant 0 : index
    %c0_10 = arith.constant 0 : index
    %13 = vector.load %arg3[%c0_8, %c0_9, %c0_10] : memref<1x1x8xf32, #tpu.memory_space<vmem>>, vector<1x1x8xf32>
    %14 = vector.shape_cast %13 : vector<1x1x8xf32> to vector<1x8xf32>
    %15 = vector.extract_strided_slice %12 {offsets = [0, 0], sizes = [8, 8], strides = [1, 1]} : vector<8x96xbf16> to vector<8x8xbf16>
    %16 = vector.extract_strided_slice %12 {offsets = [0, 32], sizes = [8, 8], strides = [1, 1]} : vector<8x96xbf16> to vector<8x8xbf16>
    %17 = vector.extract_strided_slice %12 {offsets = [0, 64], sizes = [8, 8], strides = [1, 1]} : vector<8x96xbf16> to vector<8x8xbf16>
    %cst_11 = arith.constant dense<0.000000e+00> : vector<8x8xf32>
    %18 = tpu.matmul %15, %16, %cst_11 {dimension_numbers = #tpu.dot_dimension_numbers<[1], [1], [0], [0], [0, 0, 1, 0], [], []>} : vector<8x8xbf16>, vector<8x8xbf16>, vector<8x8xf32> -> vector<8x8xf32>
    %cst_12 = arith.constant 0.353553385 : f32
    %19 = vector.broadcast %cst_12 : f32 to vector<8x8xf32>
    %20 = arith.mulf %18, %19 : vector<8x8xf32>
    %21 = vector.broadcast %14 : vector<1x8xf32> to vector<8x8xf32>
    %22 = arith.addf %20, %21 : vector<8x8xf32>
    %cst_13 = arith.constant dense<0xFF800000> : vector<8xf32>
    %23 = vector.multi_reduction <maximumf>, %22, %cst_13 [1] : vector<8x8xf32> to vector<8xf32>
    %24 = vector.shape_cast %23 : vector<8xf32> to vector<8x1xf32>
    %25 = vector.broadcast %24 : vector<8x1xf32> to vector<8x8xf32>
    %26 = arith.subf %22, %25 : vector<8x8xf32>
    %27 = math.exp %26 : vector<8x8xf32>
    %cst_14 = arith.constant dense<0.000000e+00> : vector<8xf32>
    %28 = vector.multi_reduction <add>, %27, %cst_14 [1] : vector<8x8xf32> to vector<8xf32>
    %29 = vector.shape_cast %28 : vector<8xf32> to vector<8x1xf32>
    %30 = tpu.reciprocal %29 {approx = true} : vector<8x1xf32> -> vector<8x1xf32>
    %31 = vector.broadcast %30 : vector<8x1xf32> to vector<8x8xf32>
    %32 = arith.mulf %27, %31 : vector<8x8xf32>
    %33 = arith.truncf %32 : vector<8x8xf32> to vector<8x8xbf16>
    %cst_15 = arith.constant dense<0.000000e+00> : vector<8x8xf32>
    %34 = tpu.matmul %33, %17, %cst_15 {dimension_numbers = #tpu.dot_dimension_numbers<[1], [0], [0], [1], [0, 0, 1, 1], [], []>} : vector<8x8xbf16>, vector<8x8xbf16>, vector<8x8xf32> -> vector<8x8xf32>
    %35 = vector.extract_strided_slice %12 {offsets = [0, 8], sizes = [8, 8], strides = [1, 1]} : vector<8x96xbf16> to vector<8x8xbf16>
    %36 = vector.extract_strided_slice %12 {offsets = [0, 40], sizes = [8, 8], strides = [1, 1]} : vector<8x96xbf16> to vector<8x8xbf16>
    %37 = vector.extract_strided_slice %12 {offsets = [0, 72], sizes = [8, 8], strides = [1, 1]} : vector<8x96xbf16> to vector<8x8xbf16>
    %cst_16 = arith.constant dense<0.000000e+00> : vector<8x8xf32>
    %38 = tpu.matmul %35, %36, %cst_16 {dimension_numbers = #tpu.dot_dimension_numbers<[1], [1], [0], [0], [0, 0, 1, 0], [], []>} : vector<8x8xbf16>, vector<8x8xbf16>, vector<8x8xf32> -> vector<8x8xf32>
    %cst_17 = arith.constant 0.353553385 : f32
    %39 = vector.broadcast %cst_17 : f32 to vector<8x8xf32>
    %40 = arith.mulf %38, %39 : vector<8x8xf32>
    %41 = vector.broadcast %14 : vector<1x8xf32> to vector<8x8xf32>
    %42 = arith.addf %40, %41 : vector<8x8xf32>
    %cst_18 = arith.constant dense<0xFF800000> : vector<8xf32>
    %43 = vector.multi_reduction <maximumf>, %42, %cst_18 [1] : vector<8x8xf32> to vector<8xf32>
    %44 = vector.shape_cast %43 : vector<8xf32> to vector<8x1xf32>
    %45 = vector.broadcast %44 : vector<8x1xf32> to vector<8x8xf32>
    %46 = arith.subf %42, %45 : vector<8x8xf32>
    %47 = math.exp %46 : vector<8x8xf32>
    %cst_19 = arith.constant dense<0.000000e+00> : vector<8xf32>
    %48 = vector.multi_reduction <add>, %47, %cst_19 [1] : vector<8x8xf32> to vector<8xf32>
    %49 = vector.shape_cast %48 : vector<8xf32> to vector<8x1xf32>
    %50 = tpu.reciprocal %49 {approx = true} : vector<8x1xf32> -> vector<8x1xf32>
    %51 = vector.broadcast %50 : vector<8x1xf32> to vector<8x8xf32>
    %52 = arith.mulf %47, %51 : vector<8x8xf32>
    %53 = arith.truncf %52 : vector<8x8xf32> to vector<8x8xbf16>
    %cst_20 = arith.constant dense<0.000000e+00> : vector<8x8xf32>
    %54 = tpu.matmul %53, %37, %cst_20 {dimension_numbers = #tpu.dot_dimension_numbers<[1], [0], [0], [1], [0, 0, 1, 1], [], []>} : vector<8x8xbf16>, vector<8x8xbf16>, vector<8x8xf32> -> vector<8x8xf32>
    %55 = vector.extract_strided_slice %12 {offsets = [0, 16], sizes = [8, 8], strides = [1, 1]} : vector<8x96xbf16> to vector<8x8xbf16>
    %56 = vector.extract_strided_slice %12 {offsets = [0, 48], sizes = [8, 8], strides = [1, 1]} : vector<8x96xbf16> to vector<8x8xbf16>
    %57 = vector.extract_strided_slice %12 {offsets = [0, 80], sizes = [8, 8], strides = [1, 1]} : vector<8x96xbf16> to vector<8x8xbf16>
    %cst_21 = arith.constant dense<0.000000e+00> : vector<8x8xf32>
    %58 = tpu.matmul %55, %56, %cst_21 {dimension_numbers = #tpu.dot_dimension_numbers<[1], [1], [0], [0], [0, 0, 1, 0], [], []>} : vector<8x8xbf16>, vector<8x8xbf16>, vector<8x8xf32> -> vector<8x8xf32>
    %cst_22 = arith.constant 0.353553385 : f32
    %59 = vector.broadcast %cst_22 : f32 to vector<8x8xf32>
    %60 = arith.mulf %58, %59 : vector<8x8xf32>
    %61 = vector.broadcast %14 : vector<1x8xf32> to vector<8x8xf32>
    %62 = arith.addf %60, %61 : vector<8x8xf32>
    %cst_23 = arith.constant dense<0xFF800000> : vector<8xf32>
    %63 = vector.multi_reduction <maximumf>, %62, %cst_23 [1] : vector<8x8xf32> to vector<8xf32>
    %64 = vector.shape_cast %63 : vector<8xf32> to vector<8x1xf32>
    %65 = vector.broadcast %64 : vector<8x1xf32> to vector<8x8xf32>
    %66 = arith.subf %62, %65 : vector<8x8xf32>
    %67 = math.exp %66 : vector<8x8xf32>
    %cst_24 = arith.constant dense<0.000000e+00> : vector<8xf32>
    %68 = vector.multi_reduction <add>, %67, %cst_24 [1] : vector<8x8xf32> to vector<8xf32>
    %69 = vector.shape_cast %68 : vector<8xf32> to vector<8x1xf32>
    %70 = tpu.reciprocal %69 {approx = true} : vector<8x1xf32> -> vector<8x1xf32>
    %71 = vector.broadcast %70 : vector<8x1xf32> to vector<8x8xf32>
    %72 = arith.mulf %67, %71 : vector<8x8xf32>
    %73 = arith.truncf %72 : vector<8x8xf32> to vector<8x8xbf16>
    %cst_25 = arith.constant dense<0.000000e+00> : vector<8x8xf32>
    %74 = tpu.matmul %73, %57, %cst_25 {dimension_numbers = #tpu.dot_dimension_numbers<[1], [0], [0], [1], [0, 0, 1, 1], [], []>} : vector<8x8xbf16>, vector<8x8xbf16>, vector<8x8xf32> -> vector<8x8xf32>
    %75 = vector.extract_strided_slice %12 {offsets = [0, 24], sizes = [8, 8], strides = [1, 1]} : vector<8x96xbf16> to vector<8x8xbf16>
    %76 = vector.extract_strided_slice %12 {offsets = [0, 56], sizes = [8, 8], strides = [1, 1]} : vector<8x96xbf16> to vector<8x8xbf16>
    %77 = vector.extract_strided_slice %12 {offsets = [0, 88], sizes = [8, 8], strides = [1, 1]} : vector<8x96xbf16> to vector<8x8xbf16>
    %cst_26 = arith.constant dense<0.000000e+00> : vector<8x8xf32>
    %78 = tpu.matmul %75, %76, %cst_26 {dimension_numbers = #tpu.dot_dimension_numbers<[1], [1], [0], [0], [0, 0, 1, 0], [], []>} : vector<8x8xbf16>, vector<8x8xbf16>, vector<8x8xf32> -> vector<8x8xf32>
    %cst_27 = arith.constant 0.353553385 : f32
    %79 = vector.broadcast %cst_27 : f32 to vector<8x8xf32>
    %80 = arith.mulf %78, %79 : vector<8x8xf32>
    %81 = vector.broadcast %14 : vector<1x8xf32> to vector<8x8xf32>
    %82 = arith.addf %80, %81 : vector<8x8xf32>
    %cst_28 = arith.constant dense<0xFF800000> : vector<8xf32>
    %83 = vector.multi_reduction <maximumf>, %82, %cst_28 [1] : vector<8x8xf32> to vector<8xf32>
    %84 = vector.shape_cast %83 : vector<8xf32> to vector<8x1xf32>
    %85 = vector.broadcast %84 : vector<8x1xf32> to vector<8x8xf32>
    %86 = arith.subf %82, %85 : vector<8x8xf32>
    %87 = math.exp %86 : vector<8x8xf32>
    %cst_29 = arith.constant dense<0.000000e+00> : vector<8xf32>
    %88 = vector.multi_reduction <add>, %87, %cst_29 [1] : vector<8x8xf32> to vector<8xf32>
    %89 = vector.shape_cast %88 : vector<8xf32> to vector<8x1xf32>
    %90 = tpu.reciprocal %89 {approx = true} : vector<8x1xf32> -> vector<8x1xf32>
    %91 = vector.broadcast %90 : vector<8x1xf32> to vector<8x8xf32>
    %92 = arith.mulf %87, %91 : vector<8x8xf32>
    %93 = arith.truncf %92 : vector<8x8xf32> to vector<8x8xbf16>
    %cst_30 = arith.constant dense<0.000000e+00> : vector<8x8xf32>
    %94 = tpu.matmul %93, %77, %cst_30 {dimension_numbers = #tpu.dot_dimension_numbers<[1], [0], [0], [1], [0, 0, 1, 1], [], []>} : vector<8x8xbf16>, vector<8x8xbf16>, vector<8x8xf32> -> vector<8x8xf32>
    %95 = tpu.concatenate %34, %54, %74, %94 in 1 : vector<8x8xf32>, vector<8x8xf32>, vector<8x8xf32>, vector<8x8xf32> -> vector<8x32xf32>
    %96 = arith.truncf %95 : vector<8x32xf32> to vector<8x32xbf16>
    %c0_31 = arith.constant 0 : index
    %c0_32 = arith.constant 0 : index
    %c0_33 = arith.constant 0 : index
    %97 = vector.load %arg7[%c0_31, %c0_32, %c0_33] : memref<1x32x32xbf16, #tpu.memory_space<vmem>>, vector<1x32x32xbf16>
    %98 = vector.shape_cast %97 : vector<1x32x32xbf16> to vector<32x32xbf16>
    %cst_34 = arith.constant dense<0.000000e+00> : vector<8x32xf32>
    %99 = tpu.matmul %96, %98, %cst_34 {dimension_numbers = #tpu.dot_dimension_numbers<[1], [0], [0], [1], [0, 0, 1, 1], [], []>} : vector<8x32xbf16>, vector<32x32xbf16>, vector<8x32xf32> -> vector<8x32xf32>
    %c0_35 = arith.constant 0 : index
    %c0_36 = arith.constant 0 : index
    %c0_37 = arith.constant 0 : index
    %100 = vector.load %arg11[%c0_35, %c0_36, %c0_37] : memref<1x2x32xf32, #tpu.memory_space<vmem>>, vector<1x1x32xf32>
    %101 = vector.shape_cast %100 : vector<1x1x32xf32> to vector<1x32xf32>
    %102 = vector.broadcast %101 : vector<1x32xf32> to vector<8x32xf32>
    %103 = arith.addf %99, %102 : vector<8x32xf32>
    %104 = arith.addf %3, %103 : vector<8x32xf32>
    %c0_38 = arith.constant 0 : index
    %c0_39 = arith.constant 0 : index
    %c0_40 = arith.constant 0 : index
    %105 = vector.load %arg12[%c0_38, %c0_39, %c0_40] : memref<1x4x32xf32, #tpu.memory_space<vmem>>, vector<1x1x32xf32>
    %106 = vector.shape_cast %105 : vector<1x1x32xf32> to vector<1x32xf32>
    %c0_41 = arith.constant 0 : index
    %c1 = arith.constant 1 : index
    %c0_42 = arith.constant 0 : index
    %107 = vector.load %arg12[%c0_41, %c1, %c0_42] : memref<1x4x32xf32, #tpu.memory_space<vmem>>, vector<1x1x32xf32>
    %108 = vector.shape_cast %107 : vector<1x1x32xf32> to vector<1x32xf32>
    %cst_43 = arith.constant dense<0.000000e+00> : vector<8xf32>
    %109 = vector.multi_reduction <add>, %104, %cst_43 [1] : vector<8x32xf32> to vector<8xf32>
    %110 = vector.shape_cast %109 : vector<8xf32> to vector<8x1xf32>
    %cst_44 = arith.constant 3.200000e+01 : f32
    %111 = vector.broadcast %cst_44 : f32 to vector<8x1xf32>
    %112 = arith.divf %110, %111 : vector<8x1xf32>
    %113 = vector.broadcast %112 : vector<8x1xf32> to vector<8x32xf32>
    %114 = arith.subf %104, %113 : vector<8x32xf32>
    %115 = arith.mulf %114, %114 : vector<8x32xf32>
    %cst_45 = arith.constant dense<0.000000e+00> : vector<8xf32>
    %116 = vector.multi_reduction <add>, %115, %cst_45 [1] : vector<8x32xf32> to vector<8xf32>
    %117 = vector.shape_cast %116 : vector<8xf32> to vector<8x1xf32>
    %cst_46 = arith.constant 3.200000e+01 : f32
    %118 = vector.broadcast %cst_46 : f32 to vector<8x1xf32>
    %119 = arith.divf %117, %118 : vector<8x1xf32>
    %120 = vector.broadcast %112 : vector<8x1xf32> to vector<8x32xf32>
    %121 = arith.subf %104, %120 : vector<8x32xf32>
    %cst_47 = arith.constant 9.99999974E-6 : f32
    %122 = vector.broadcast %cst_47 : f32 to vector<8x1xf32>
    %123 = arith.addf %119, %122 : vector<8x1xf32>
    %124 = math.rsqrt %123 : vector<8x1xf32>
    %125 = vector.broadcast %124 : vector<8x1xf32> to vector<8x32xf32>
    %126 = arith.mulf %121, %125 : vector<8x32xf32>
    %127 = vector.broadcast %106 : vector<1x32xf32> to vector<8x32xf32>
    %128 = arith.mulf %126, %127 : vector<8x32xf32>
    %129 = vector.broadcast %108 : vector<1x32xf32> to vector<8x32xf32>
    %130 = arith.addf %128, %129 : vector<8x32xf32>
    %131 = arith.truncf %130 : vector<8x32xf32> to vector<8x32xbf16>
    %c0_48 = arith.constant 0 : index
    %c0_49 = arith.constant 0 : index
    %c0_50 = arith.constant 0 : index
    %132 = vector.load %arg8[%c0_48, %c0_49, %c0_50] : memref<1x32x64xbf16, #tpu.memory_space<vmem>>, vector<1x32x64xbf16>
    %133 = vector.shape_cast %132 : vector<1x32x64xbf16> to vector<32x64xbf16>
    %cst_51 = arith.constant dense<0.000000e+00> : vector<8x64xf32>
    %134 = tpu.matmul %131, %133, %cst_51 {dimension_numbers = #tpu.dot_dimension_numbers<[1], [0], [0], [1], [0, 0, 1, 1], [], []>} : vector<8x32xbf16>, vector<32x64xbf16>, vector<8x64xf32> -> vector<8x64xf32>
    %c0_52 = arith.constant 0 : index
    %c0_53 = arith.constant 0 : index
    %c0_54 = arith.constant 0 : index
    %135 = vector.load %arg9[%c0_52, %c0_53, %c0_54] : memref<1x1x64xf32, #tpu.memory_space<vmem>>, vector<1x1x64xf32>
    %136 = vector.shape_cast %135 : vector<1x1x64xf32> to vector<1x64xf32>
    %137 = vector.broadcast %136 : vector<1x64xf32> to vector<8x64xf32>
    %138 = arith.addf %134, %137 : vector<8x64xf32>
    %139 = arith.mulf %138, %138 : vector<8x64xf32>
    %140 = arith.mulf %138, %139 : vector<8x64xf32>
    %cst_55 = arith.constant 4.471500e-02 : f32
    %141 = vector.broadcast %cst_55 : f32 to vector<8x64xf32>
    %142 = arith.mulf %141, %140 : vector<8x64xf32>
    %143 = arith.addf %138, %142 : vector<8x64xf32>
    %cst_56 = arith.constant 0.797884583 : f32
    %144 = vector.broadcast %cst_56 : f32 to vector<8x64xf32>
    %145 = arith.mulf %144, %143 : vector<8x64xf32>
    %146 = math.tanh %145 : vector<8x64xf32>
    %cst_57 = arith.constant 1.000000e+00 : f32
    %147 = vector.broadcast %cst_57 : f32 to vector<8x64xf32>
    %148 = arith.addf %147, %146 : vector<8x64xf32>
    %cst_58 = arith.constant 5.000000e-01 : f32
    %149 = vector.broadcast %cst_58 : f32 to vector<8x64xf32>
    %150 = arith.mulf %149, %148 : vector<8x64xf32>
    %151 = arith.mulf %138, %150 : vector<8x64xf32>
    %152 = arith.truncf %151 : vector<8x64xf32> to vector<8x64xbf16>
    %c0_59 = arith.constant 0 : index
    %c0_60 = arith.constant 0 : index
    %c0_61 = arith.constant 0 : index
    %153 = vector.load %arg10[%c0_59, %c0_60, %c0_61] : memref<1x64x32xbf16, #tpu.memory_space<vmem>>, vector<1x64x32xbf16>
    %154 = vector.shape_cast %153 : vector<1x64x32xbf16> to vector<64x32xbf16>
    %cst_62 = arith.constant dense<0.000000e+00> : vector<8x32xf32>
    %155 = tpu.matmul %152, %154, %cst_62 {dimension_numbers = #tpu.dot_dimension_numbers<[1], [0], [0], [1], [0, 0, 1, 1], [], []>} : vector<8x64xbf16>, vector<64x32xbf16>, vector<8x32xf32> -> vector<8x32xf32>
    %c0_63 = arith.constant 0 : index
    %c1_64 = arith.constant 1 : index
    %c0_65 = arith.constant 0 : index
    %156 = vector.load %arg11[%c0_63, %c1_64, %c0_65] : memref<1x2x32xf32, #tpu.memory_space<vmem>>, vector<1x1x32xf32>
    %157 = vector.shape_cast %156 : vector<1x1x32xf32> to vector<1x32xf32>
    %158 = vector.broadcast %157 : vector<1x32xf32> to vector<8x32xf32>
    %159 = arith.addf %155, %158 : vector<8x32xf32>
    %160 = arith.addf %130, %159 : vector<8x32xf32>
    %c0_66 = arith.constant 0 : index
    %c2 = arith.constant 2 : index
    %c0_67 = arith.constant 0 : index
    %161 = vector.load %arg12[%c0_66, %c2, %c0_67] : memref<1x4x32xf32, #tpu.memory_space<vmem>>, vector<1x1x32xf32>
    %162 = vector.shape_cast %161 : vector<1x1x32xf32> to vector<1x32xf32>
    %c0_68 = arith.constant 0 : index
    %c3 = arith.constant 3 : index
    %c0_69 = arith.constant 0 : index
    %163 = vector.load %arg12[%c0_68, %c3, %c0_69] : memref<1x4x32xf32, #tpu.memory_space<vmem>>, vector<1x1x32xf32>
    %164 = vector.shape_cast %163 : vector<1x1x32xf32> to vector<1x32xf32>
    %cst_70 = arith.constant dense<0.000000e+00> : vector<8xf32>
    %165 = vector.multi_reduction <add>, %160, %cst_70 [1] : vector<8x32xf32> to vector<8xf32>
    %166 = vector.shape_cast %165 : vector<8xf32> to vector<8x1xf32>
    %cst_71 = arith.constant 3.200000e+01 : f32
    %167 = vector.broadcast %cst_71 : f32 to vector<8x1xf32>
    %168 = arith.divf %166, %167 : vector<8x1xf32>
    %169 = vector.broadcast %168 : vector<8x1xf32> to vector<8x32xf32>
    %170 = arith.subf %160, %169 : vector<8x32xf32>
    %171 = arith.mulf %170, %170 : vector<8x32xf32>
    %cst_72 = arith.constant dense<0.000000e+00> : vector<8xf32>
    %172 = vector.multi_reduction <add>, %171, %cst_72 [1] : vector<8x32xf32> to vector<8xf32>
    %173 = vector.shape_cast %172 : vector<8xf32> to vector<8x1xf32>
    %cst_73 = arith.constant 3.200000e+01 : f32
    %174 = vector.broadcast %cst_73 : f32 to vector<8x1xf32>
    %175 = arith.divf %173, %174 : vector<8x1xf32>
    %176 = vector.broadcast %168 : vector<8x1xf32> to vector<8x32xf32>
    %177 = arith.subf %160, %176 : vector<8x32xf32>
    %cst_74 = arith.constant 9.99999974E-6 : f32
    %178 = vector.broadcast %cst_74 : f32 to vector<8x1xf32>
    %179 = arith.addf %175, %178 : vector<8x1xf32>
    %180 = math.rsqrt %179 : vector<8x1xf32>
    %181 = vector.broadcast %180 : vector<8x1xf32> to vector<8x32xf32>
    %182 = arith.mulf %177, %181 : vector<8x32xf32>
    %183 = vector.broadcast %162 : vector<1x32xf32> to vector<8x32xf32>
    %184 = arith.mulf %182, %183 : vector<8x32xf32>
    %185 = vector.broadcast %164 : vector<1x32xf32> to vector<8x32xf32>
    %186 = arith.addf %184, %185 : vector<8x32xf32>
    %c0_75 = arith.constant 0 : index
    %c0_76 = arith.constant 0 : index
    %187 = vector.load %arg16[%c0_75, %c0_76] : memref<8x32xf32, #tpu.memory_space<vmem>>, vector<8x32xf32>
    tpu.vector_store %arg16[%c0_75, %c0_76], %186 {strides = array<i32>} : memref<8x32xf32, #tpu.memory_space<vmem>>, vector<8x32xf32>,
    %c1_i32 = arith.constant 1 : i32
    %188 = arith.cmpi eq, %arg1, %c1_i32 : i32
    %189 = arith.extui %188 : i1 to i32
    %c0_i32_77 = arith.constant 0 : i32
    %190 = arith.cmpi ne, %189, %c0_i32_77 : i32
    scf.if %190 {
      %cst_78 = arith.constant dense<0.000000e+00> : vector<32xf32>
      %191 = vector.multi_reduction <add>, %186, %cst_78 [0] : vector<8x32xf32> to vector<32xf32>
      %192 = vector.shape_cast %191 : vector<32xf32> to vector<1x32xf32>
      %cst_79 = arith.constant 1.250000e-01 : f32
      %193 = vector.broadcast %cst_79 : f32 to vector<1x32xf32>
      %194 = arith.mulf %192, %193 : vector<1x32xf32>
      %195 = arith.mulf %194, %194 : vector<1x32xf32>
      %cst_80 = arith.constant dense<0.000000e+00> : vector<1xf32>
      %196 = vector.multi_reduction <add>, %195, %cst_80 [1] : vector<1x32xf32> to vector<1xf32>
      %197 = vector.shape_cast %196 : vector<1xf32> to vector<1x1xf32>
      %198 = math.sqrt %197 : vector<1x1xf32>
      %cst_81 = arith.constant 9.99999996E-13 : f32
      %199 = vector.broadcast %cst_81 : f32 to vector<1x1xf32>
      %200 = arith.maximumf %198, %199 : vector<1x1xf32>
      %201 = vector.broadcast %200 : vector<1x1xf32> to vector<1x32xf32>
      %202 = arith.divf %194, %201 : vector<1x32xf32>
      %c0_82 = arith.constant 0 : index
      %c0_83 = arith.constant 0 : index
      %203 = vector.load %arg13[%c0_82, %c0_83] : memref<3x32xf32, #tpu.memory_space<vmem>>, vector<1x32xf32>
      %204 = arith.mulf %202, %203 : vector<1x32xf32>
      %c1_84 = arith.constant 1 : index
      %c0_85 = arith.constant 0 : index
      %205 = vector.load %arg13[%c1_84, %c0_85] : memref<3x32xf32, #tpu.memory_space<vmem>>, vector<1x32xf32>
      %206 = arith.addf %204, %205 : vector<1x32xf32>
      %cst_86 = arith.constant 0.000000e+00 : f32
      %207 = vector.broadcast %cst_86 : f32 to vector<1x32xf32>
      %208 = arith.maximumf %206, %207 : vector<1x32xf32>
      %c2_87 = arith.constant 2 : index
      %c0_88 = arith.constant 0 : index
      %209 = vector.load %arg13[%c2_87, %c0_88] : memref<3x32xf32, #tpu.memory_space<vmem>>, vector<1x32xf32>
      %210 = arith.mulf %208, %209 : vector<1x32xf32>
      %cst_89 = arith.constant dense<0.000000e+00> : vector<1xf32>
      %211 = vector.multi_reduction <add>, %210, %cst_89 [1] : vector<1x32xf32> to vector<1xf32>
      %212 = vector.shape_cast %211 : vector<1xf32> to vector<1x1xf32>
      %c0_90 = arith.constant 0 : index
      %c0_91 = arith.constant 0 : index
      %213 = vector.load %arg14[%c0_90, %c0_91] : memref<1x1xf32, #tpu.memory_space<vmem>>, vector<1x1xf32>
      %214 = arith.addf %212, %213 : vector<1x1xf32>
      %c0_92 = arith.constant 0 : index
      %c0_93 = arith.constant 0 : index
      %c0_94 = arith.constant 0 : index
      %215 = vector.load %arg15[%c0_92, %c0_93, %c0_94] : memref<1x1x1xf32, #tpu.memory_space<vmem>>, vector<1x1x1xf32>
      %216 = vector.shape_cast %215 : vector<1x1x1xf32> to vector<1x1xf32>
      %217 = vector.shape_cast %214 : vector<1x1xf32> to vector<1x1x1xf32>
      tpu.vector_store %arg15[%c0_92, %c0_93, %c0_94], %217 {strides = array<i32>} : memref<1x1x1xf32, #tpu.memory_space<vmem>>, vector<1x1x1xf32>,
    } else {
    }
    return
  }
  func.func @transform_0(%arg0: i32, %arg1: i32) -> (i32, i32, i32) {
    %c0_i32 = arith.constant 0 : i32
    %c0_i32_0 = arith.constant 0 : i32
    %c0_i32_1 = arith.constant 0 : i32
    return %arg0, %c0_i32, %c0_i32_0 : i32, i32, i32
  }
  func.func @transform_1(%arg0: i32, %arg1: i32) -> (i32, i32, i32) {
    %c0_i32 = arith.constant 0 : i32
    %c0_i32_0 = arith.constant 0 : i32
    %c0_i32_1 = arith.constant 0 : i32
    return %arg0, %c0_i32, %c0_i32_0 : i32, i32, i32
  }
  func.func @transform_2(%arg0: i32, %arg1: i32) -> (i32, i32) {
    %c0_i32 = arith.constant 0 : i32
    %c0_i32_0 = arith.constant 0 : i32
    %c0_i32_1 = arith.constant 0 : i32
    return %c0_i32, %c0_i32_0 : i32, i32
  }
  func.func @transform_3(%arg0: i32, %arg1: i32) -> (i32, i32, i32) {
    %c0_i32 = arith.constant 0 : i32
    %c0_i32_0 = arith.constant 0 : i32
    %c0_i32_1 = arith.constant 0 : i32
    return %arg1, %c0_i32, %c0_i32_0 : i32, i32, i32
  }
  func.func @transform_4(%arg0: i32, %arg1: i32) -> (i32, i32, i32) {
    %c0_i32 = arith.constant 0 : i32
    %c0_i32_0 = arith.constant 0 : i32
    %c0_i32_1 = arith.constant 0 : i32
    return %arg1, %c0_i32, %c0_i32_0 : i32, i32, i32
  }
  func.func @transform_5(%arg0: i32, %arg1: i32) -> (i32, i32, i32) {
    %c0_i32 = arith.constant 0 : i32
    %c0_i32_0 = arith.constant 0 : i32
    %c0_i32_1 = arith.constant 0 : i32
    return %arg1, %c0_i32, %c0_i32_0 : i32, i32, i32
  }
  func.func @transform_6(%arg0: i32, %arg1: i32) -> (i32, i32, i32) {
    %c0_i32 = arith.constant 0 : i32
    %c0_i32_0 = arith.constant 0 : i32
    %c0_i32_1 = arith.constant 0 : i32
    return %arg1, %c0_i32, %c0_i32_0 : i32, i32, i32
  }
  func.func @transform_7(%arg0: i32, %arg1: i32) -> (i32, i32, i32) {
    %c0_i32 = arith.constant 0 : i32
    %c0_i32_0 = arith.constant 0 : i32
    %c0_i32_1 = arith.constant 0 : i32
    return %arg1, %c0_i32, %c0_i32_0 : i32, i32, i32
  }
  func.func @transform_8(%arg0: i32, %arg1: i32) -> (i32, i32, i32) {
    %c0_i32 = arith.constant 0 : i32
    %c0_i32_0 = arith.constant 0 : i32
    %c0_i32_1 = arith.constant 0 : i32
    return %arg1, %c0_i32, %c0_i32_0 : i32, i32, i32
  }
  func.func @transform_9(%arg0: i32, %arg1: i32) -> (i32, i32, i32) {
    %c0_i32 = arith.constant 0 : i32
    %c0_i32_0 = arith.constant 0 : i32
    %c0_i32_1 = arith.constant 0 : i32
    return %arg1, %c0_i32, %c0_i32_0 : i32, i32, i32
  }
  func.func @transform_10(%arg0: i32, %arg1: i32) -> (i32, i32, i32) {
    %c0_i32 = arith.constant 0 : i32
    %c0_i32_0 = arith.constant 0 : i32
    %c0_i32_1 = arith.constant 0 : i32
    return %arg1, %c0_i32, %c0_i32_0 : i32, i32, i32
  }
  func.func @transform_11(%arg0: i32, %arg1: i32) -> (i32, i32) {
    %c0_i32 = arith.constant 0 : i32
    %c0_i32_0 = arith.constant 0 : i32
    %c0_i32_1 = arith.constant 0 : i32
    return %c0_i32, %c0_i32_0 : i32, i32
  }
  func.func @transform_12(%arg0: i32, %arg1: i32) -> (i32, i32) {
    %c0_i32 = arith.constant 0 : i32
    %c0_i32_0 = arith.constant 0 : i32
    %c0_i32_1 = arith.constant 0 : i32
    return %c0_i32, %c0_i32_0 : i32, i32
  }
  func.func @transform_13(%arg0: i32, %arg1: i32) -> (i32, i32, i32) {
    %c0_i32 = arith.constant 0 : i32
    %c0_i32_0 = arith.constant 0 : i32
    %c0_i32_1 = arith.constant 0 : i32
    return %arg0, %c0_i32, %c0_i32_0 : i32, i32, i32
  }
}

</mosaic_0001>

<bundles_post_ra>
// kernel: forward.1
= control target key start
LH: loop header
LB: loop body
LE: loop exit
PB: predicated region body
PF: predicated region fallthrough
CT: control target
= control target key end

     0   :  { %s2050_s27 = smov 0   ;;  %s2052_s28 = smov 0   ;;  %s2309_s0 = inlined_call_operand.vmem [shape: f32[2,8,32], index: 0, kind: input, shape index: {}]   ;;  %s2310_s1 = inlined_call_operand.vmem [shape: f32[2,1,8], index: 1, kind: input, shape index: {}]   ;;  %s2311_s2 = inlined_call_operand.vmem [shape: f32[2,32], index: 2, kind: input, shape index: {}]   ;;  %s2312_s3 = inlined_call_operand.vmem [shape: bf16[2,32,96], index: 3, kind: input, shape index: {}]   ;;  %s2313_s4 = inlined_call_operand.vmem [shape: f32[2,1,96], index: 4, kind: input, shape index: {}]   ;;  %s2314_s5 = inlined_call_operand.vmem [shape: bf16[2,32,32], index: 5, kind: input, shape index: {}]   ;;  %s2315_s6 = inlined_call_operand.vmem [shape: bf16[2,32,64], index: 6, kind: input, shape index: {}]   ;;  %s2316_s7 = inlined_call_operand.vmem [shape: f32[2,1,64], index: 7, kind: input, shape index: {}]   ;;  %s2317_s8 = inlined_call_operand.vmem [shape: bf16[2,64,32], index: 8, kind: input, shape index: {}]   ;;  %s2318_s9 = inlined_call_operand.vmem [shape: f32[2,2,32], index: 9, kind: input, shape index: {}]   ;;  %s2319_s10 = inlined_call_operand.vmem [shape: f32[2,4,32], index: 10, kind: input, shape index: {}]   ;;  %s2320_s11 = inlined_call_operand.vmem [shape: f32[3,32], index: 11, kind: input, shape index: {}]   ;;  %s2321_s12 = inlined_call_operand.<no memory space> [shape: f32[1,1], index: 12, kind: input, shape index: {}]   ;;  %s2322_s13 = inlined_call_operand.vmem [shape: f32[2,1,1], index: 13, kind: output, shape index: {}]  }
   0x1   :  { %2328 = sst [smem:[#allocation9_spill]] %s2309_s0  ;;  %v18_v0 = vstv %s2321_s12  ;;  %s2054_s29 = smov 0  }
   0x2   :  { %2329 = sst [smem:[#allocation10_spill]] %s2311_s2  ;;  %19 = vst [vmem:[#allocation3] sm:$0x1] %v18_v0  ;;  %s2056_s30 = smov 0  }
   0x3   :  { %2330 = sst [smem:[#allocation11_spill]] %s2312_s3  ;;  %s2058_s14 = smov 0  }
   0x4   :  { %2331 = sst [smem:[#allocation12_spill]] %s2320_s11 }
   0x5 LB: > { %2332 = sst [smem:[#allocation4_spill]] %s1951_s29  ;;  %s34_s12 = sadd.s32 1, %s1951_s29  ;;  %s1959_s14 = sphi %s2058_s14, %s25_s14   ;;  %s1955_s30 = sphi %s2056_s30, %s2350_s30   ;;  %s1951_s29 = sphi %s2054_s29, %s2349_s29   ;;  %s1947_s28 = sphi %s2052_s28, %s2348_s28   ;;  %s1943_s27 = sphi %s2050_s27, %s2347_s27  }
   0x6   : > { %2333 = sst [smem:[#allocation5_spill]] %s1955_s30  ;;  %s37_s15 = sadd.s32 1, %s1955_s30 }
   0x7   : > { %2334 = sst [smem:[#allocation6_spill]] %s1959_s14  ;;  %p35_p0 = scmp.ge.s32.totalorder %s34_s12, 2 }
   0x8   : > { %p1660_p1 = scmp.ge.s32.totalorder %s1959_s14, 1  ;;  %p482_p2 = scmp.lt.s32.totalorder %s1959_s14, 5 }
   0x9   : > { %s2352_s12 = smov (%p35_p0, %s34_s12), 0  ;;  %s2354_s15 = smov (!%p35_p0, %s37_s15), %s1955_s30 }
   0xa   : > { %2335 = sst [smem:[#allocation7_spill]] %s2352_s12  ;;  %p483_p3 = pnand %p1660_p1, %p482_p2 }
   0xb   : > { %p39_p4 = scmp.ge.s32.totalorder %s2354_s15, 2  ;;  %p560_p5 = scmp.lt.s32.totalorder (!%p483_p3), %s1947_s28, 1 }
   0xc   : > { %486 = sbr.rel (%p483_p3) target bundleno = 3257 (0xcb9), region = 72  ;;  %p567_p6 = scmp.lt.s32.totalorder (!%p483_p3), %s1943_s27, 1 }
   0xd   : > { %s2356_s15 = smov (%p39_p4, %s2354_s15), 0  ;;  %s2337_s0 = sld [smem:[#allocation9_spill]] (!%p483_p3) }
   0xe   : > { %2336 = sst [smem:[#allocation8_spill]] %s2356_s15  ;;  %s2338_s3 = sld [smem:[#allocation11_spill]] (!%p483_p3) }
   0xf   : > { %p1672_p7 = scmp.ne.s32.totalorder (!%p483_p3), %s1943_s27, 0 }
  0x13   : > { %s2358_s28 = smov (!%p560_p5, %s1947_s28), 1  ;;  %vm612_vm0 = vcmask (!%p1672_p7), 261120   ;;  %s2339_s29 = sld [smem:[#allocation10_spill]] (!%p1672_p7) }
  0x14   : > { %s2086_s16 = scalar_select %p567_p6, %s1943_s27, 1 }
  0x15   : > { %s1661_s17 = sshll.u32 %s2358_s28, 3  ;;  %s603_s25 = scalar_lea.vmem %s2322_s13, %s2358_s28 }
  0x16   : > { %s563_s23 = scalar_lea.vmem %s2337_s0, %s1661_s17  ;;  %s1709_s24 = sshll.u32 %s2086_s16, 4 }
  0x17   : > { %s2100_s15 = scalar_lea.vmem %s2338_s3, %s1709_s24  ;;  %s2109_s2 = scalar_lea.vmem %s2314_s5, %s1709_s24  ;;  %v609_v1 = vld [vmem:[%s563_s23] sm:$0xff] (!%p1672_p7) }
  0x18   : > { %s2114_s21 = scalar_lea.vmem %s2315_s6, %s1709_s24  ;;  %s1712_s26 = sshll.u32 %s2086_s16, 5  ;;  %v613_v2 = vsel (!%p1672_p7), %vm612_vm0, %v609_v1, 0.0 }
  0x19   : > { %s2124_s30 = scalar_lea.vmem %s2317_s8, %s1712_s26  ;;  %s1670_s12 = sshll.u32 %s2086_s16, 1  ;;  %614 = vadd.xlane.f32.xlu0 (!%p1672_p7), %v613_v2  ;;  %v1673_v12 = vld [vmem:[%s2339_s29] ss:$0 sm:$0xff] (!%p1672_p7) }
  0x1a   : > { %s2130_s14 = scalar_lea.vmem %s2318_s9, %s1670_s12  ;;  %s1671_s3 = sshll.u32 %s2086_s16, 2 }
  0x1b   : > { %s2136_s19 = scalar_lea.vmem %s2319_s10, %s1671_s3  ;;  %608 = sbr.rel (%p1672_p7) target bundleno = 338 (0x152), region = 76 }
  0x1c   : > { %s2340_s20 = smov (!%p1672_p7), %s2339_s29 }
  0x1d   : > { %v1674_v14 = vld [vmem:[%s2340_s20 + $0x1] ss:$0 sm:$0xff] (!%p1672_p7) }
  0xa6   : > { %v615_v3 = vpop.xlane.xlu0 %614 }
  0xa7   : > { %v617_v4 = vmul.f32 0.03125, %v615_v3 }
  0xa9   : > { %v618_v5 = vsub.f32 %v609_v1, %v617_v4 }
  0xab   : > { %v619_v6 = vmul.f32 %v618_v5, %v618_v5 }
  0xad   : > { %v620_v7 = vsel %vm612_vm0, %v619_v6, 0.0 }
  0xae   : > { %621 = vadd.xlane.f32.xlu0 %v620_v7 }
 0x13b   : > { %v622_v8 = vpop.xlane.xlu0 %621 }
 0x13c   : > { %v623_v9 = vmul.f32 0.03125, %v622_v8 }
 0x13e   : > { %v624_v10 = vadd.f32 1e-05, %v623_v9 }
 0x140   : > { %1883 = vrsqrt.f32 %v624_v10 }
 0x14a   : > { %v1884_v11 = vpop.eup %1883 }
 0x14b   : > { %v626_v13 = vmul.f32 %v1884_v11, %v618_v5 }
 0x14d   : > { %v631_v15 = vmul.f32 %v1673_v12, %v626_v13 }
 0x14f   : > { %v636_v16 = vadd.f32 %v1674_v14, %v631_v15 }
 0x151   : > { %637 = vst.msk [vmem:[#allocation2] sm:$0xff] %vm612_vm0, %v636_v16 }
 0x152 PF: > { %v1885_v17 = vld [vmem:[%s2100_s15] sm:$0xff]   ;;  %v1961_v18 = vmov 0.0   ;;  %v1886_v19 = vld [vmem:[%s2100_s15 + $0x8] sm:$0xff]   ;;  %vm1962_vm1 = vmmov 0   ;;  %vm663_vm2 = vcmask 261120   ;;  %s2341_s11 = scalar_lea.vmem %s2313_s4, %s2086_s16  ;;  %s1963_s18 = smov 120  }
 0x153   : > { %1743 = vmatprep.subr.bf16.mxu0 %v1961_v18  ;;  %1751 = vmatprep.subr.bf16.mxu1 %v1961_v18  ;;  %v1675_v22 = vld [vmem:[%s2341_s11] ss:$0 sm:$0xff]  ;;  %s1964_s24 = smov 96   ;;  %s1965_s17 = smov 80   ;;  %vm712_vm3 = vcmask 64512   ;;  %vm784_vm4 = vcmask 1043456  }
 0x154   : > { %1744 = vmatpush3.bf16.msra.mxu0 %v1885_v17  ;;  %1747 = vmatprep.mubr.msk.bf16.mxu0 %vm1962_vm1, %v1961_v18  ;;  %s1966_s22 = smov 88   ;;  %s1967_s0 = smov 72   ;;  %vm1177_vm5 = vcmask 130048   ;;  %vm1179_vm6 = vcmask 195584   ;;  %vm1387_vm7 = vcmask 523264  }
 0x155   : > { %1745 = vmatprep.subr.bf16.mxu0 %v1961_v18  ;;  %1753 = vmatprep.mubr.msk.bf16.mxu1 %vm1962_vm1, %v1961_v18  ;;  %s1968_s3 = smov 112   ;;  %s1969_s29 = smov 104  }
 0x156   : > { %s2342_s15 = scalar_lea.vmem %s2310_s1, %s2358_s28  ;;  %s1970_s12 = smov 56  }
 0x157   : > { %v1680_v41 = vld [vmem:[%s2342_s15] ss:$0 sm:$0xff]  ;;  %s1971_s11 = smov 64   ;;  %p1706_p8 = scmp.ne.s32.totalorder %s1943_s27, 1 }
 0x158   : > { %v2158_v20 = vld [vmem:[#allocation2] sm:$0xff]  ;;  %1746 = vmatpush3.bf16.msra.mxu0 %v1886_v19  ;;  %vm1491_vm10 = vcmask (!%p1706_p8), 253952   ;;  %vm1497_vm11 = vcmask (!%p1706_p8), 0  }
 0x159   : > { %v639_v21 = vpack.c.bf16 %v2158_v20, %v2158_v20  ;;  %1757 = vmatprep.subr.bf16.mxu0 %v1961_v18 }
 0x15b   : > { %1748 = vmatmul.mubr.msk.bf16.vlgmr.msra.gmra.mrb[0].mxu0 %vm663_vm2, %v639_v21 }
 0x15c   : > { %1759 = vmatprep.mubr.msk.bf16.mxu0 %vm1962_vm1, %v1961_v18 }
 0x22e   : > { %v701_v23 = vpop.f32.mrb[0].mxu0 }
 0x22f   : > { %v702_v24 = vadd.f32 %v1675_v22, %v701_v23  ;;  %v1749_v25 = vpop.f32.mrb[1].mxu0 }
 0x230   : > { %v704_v26 = vpop.f32.mrb[2].mxu0 }
 0x231   : > { %v2174_v27 = vpack.c.bf16 %v702_v24, %v702_v24  ;;  %v1750_v28 = vpop.f32.mrb[3].mxu0 }
 0x233   : > { %828 = vrot.lane.b32.xlu1 %v2174_v27, %s1963_s18  ;;  %710 = vrot.lane.b32.xlu0 %v2174_v27, %s1964_s24  ;;  %s1972_s18 = smov 40   ;;  %s1973_s24 = smov 48  }
 0x237   : > { %942 = vrot.lane.b32.xlu1 %v2174_v27, %s1965_s17  ;;  %830 = vrot.lane.b32.xlu0 %v2174_v27, %s1966_s22  ;;  %s1974_s17 = smov 8   ;;  %s1975_s22 = smov 16  }
 0x23b   : > { %1054 = vrot.lane.b32.xlu1 %v2174_v27, %s1967_s0  ;;  %940 = vrot.lane.b32.xlu0 %v2174_v27, %s1968_s3  ;;  %s1976_s0 = smov 24   ;;  %s2343_s3 = scalar_lea.vmem %s2316_s7, %s2086_s16 }
 0x23f   : > { %1052 = vrot.lane.b32.xlu0 %v2174_v27, %s1969_s29 }
 0x2a5   : > { %v711_v29 = vpop.permute.xlu0 %710  ;;  %v829_v32 = vpop.permute.xlu1 %828 }
 0x2a6   : > { %v717_v30 = vsel %vm712_vm3, %v711_v29, 0 }
 0x2a7   : > { %1752 = vmatpush3.bf16.xpose.msra.mxu1 %v717_v30 }
 0x2a8   : > { %1763 = vmatprep.subr.bf16.mxu1 %v1961_v18 }
 0x2a9   : > { %v831_v31 = vpop.permute.xlu0 %830  ;;  %v943_v34 = vpop.permute.xlu1 %942 }
 0x2aa   : > { %v836_v33 = vsel %vm712_vm3, %v831_v31, 0  ;;  %v948_v35 = vsel %vm712_vm3, %v943_v34, 0 }
 0x2ad   : > { %v1055_v36 = vpop.permute.xlu1 %1054  ;;  %v941_v37 = vpop.permute.xlu0 %940 }
 0x2ae   : > { %1754 = vmatmul.mubr.msk.bf16.vlgmr.msra.gmra.mrb[0].mxu1 %vm712_vm3, %v2174_v27  ;;  %v1060_v38 = vsel %vm712_vm3, %v1055_v36, 0 }
 0x2af   : > { %1764 = vmatpush3.bf16.xpose.msra.mxu1 %v836_v33  ;;  %1765 = vmatprep.mubr.msk.bf16.mxu1 %vm1962_vm1, %v1961_v18 }
 0x2b0   : > { %1775 = vmatprep.subr.bf16.mxu1 %v1961_v18 }
 0x2b1   : > { %v1053_v39 = vpop.permute.xlu0 %1052 }
 0x2b6   : > { %1766 = vmatmul.mubr.msk.bf16.vlgmr.msra.gmra.mrb[4].mxu1 %vm712_vm3, %v829_v32 }
 0x2b7   : > { %1776 = vmatpush3.bf16.xpose.msra.mxu1 %v948_v35  ;;  %1777 = vmatprep.mubr.msk.bf16.mxu1 %vm1962_vm1, %v1961_v18 }
 0x2b8   : > { %1787 = vmatprep.subr.bf16.mxu1 %v1961_v18 }
 0x2be   : > { %1778 = vmatmul.mubr.msk.bf16.vlgmr.msra.gmra.mrb[8].mxu1 %vm712_vm3, %v941_v37 }
 0x2bf   : > { %1788 = vmatpush3.bf16.xpose.msra.mxu1 %v1060_v38  ;;  %1789 = vmatprep.mubr.msk.bf16.mxu1 %vm1962_vm1, %v1961_v18 }
 0x2c0   : > { %1799 = vmatprep.subr.bf16.mxu1 %v1961_v18 }
 0x2c6   : > { %1790 = vmatmul.mubr.msk.bf16.vlgmr.msra.gmra.mrb[12].mxu1 %vm712_vm3, %v1053_v39 }
 0x2c7   : > { %1803 = vmatprep.mubr.msk.bf16.mxu1 %vm1962_vm1, %v1961_v18 }
 0x381   : > { %v753_v40 = vpop.f32.mrb[0].mxu1 }
 0x382   : > { %v759_v42 = vmul.f32 0.35355338, %v753_v40  ;;  %v1755_v43 = vpop.f32.mrb[1].mxu1 }
 0x383   : > { %v756_v44 = vpop.f32.mrb[2].mxu1 }
 0x384   : > { %v1756_v45 = vpop.f32.mrb[3].mxu1  ;;  %v766_v46 = vadd.f32 %v1680_v41, %v759_v42 }
 0x386   : > { %v767_v47 = vsel %vm712_vm3, %v766_v46, -inf }
 0x387   : > { %768 = vmax.xlane.f32.xlu1 %v767_v47 }
 0x389   : > { %v872_v48 = vpop.f32.mrb[4].mxu1 }
 0x38a   : > { %v878_v49 = vmul.f32 0.35355338, %v872_v48  ;;  %v1767_v50 = vpop.f32.mrb[5].mxu1 }
 0x38b   : > { %v875_v51 = vpop.f32.mrb[6].mxu1 }
 0x38c   : > { %v1768_v52 = vpop.f32.mrb[7].mxu1  ;;  %v879_v53 = vadd.f32 %v1680_v41, %v878_v49 }
 0x38e   : > { %v880_v54 = vsel %vm712_vm3, %v879_v53, -inf }
 0x38f   : > { %881 = vmax.xlane.f32.xlu0 %v880_v54 }
 0x391   : > { %v984_v55 = vpop.f32.mrb[8].mxu1 }
 0x392   : > { %v990_v56 = vmul.f32 0.35355338, %v984_v55  ;;  %v1779_v57 = vpop.f32.mrb[9].mxu1 }
 0x393   : > { %v987_v58 = vpop.f32.mrb[10].mxu1 }
 0x394   : > { %v1780_v59 = vpop.f32.mrb[11].mxu1  ;;  %v991_v60 = vadd.f32 %v1680_v41, %v990_v56 }
 0x395   : > { %v1887_v59 = vld [vmem:[%s2109_s2] sm:$0xff]  }
 0x396   : > { %v992_v61 = vsel %vm712_vm3, %v991_v60, -inf  ;;  %1800 = vmatpush3.bf16.msra.mxu1 %v1887_v59 }
 0x397   : > { %993 = vmax.xlane.f32.xlu0 %v992_v61  ;;  %1801 = vmatprep.subr.bf16.mxu1 %v1961_v18 }
 0x399   : > { %v1096_v62 = vpop.f32.mrb[12].mxu1 }
 0x39a   : > { %v1102_v63 = vmul.f32 0.35355338, %v1096_v62  ;;  %v1791_v0 = vpop.f32.mrb[13].mxu1 }
 0x39b   : > { %v1099_v1 = vpop.f32.mrb[14].mxu1 }
 0x39c   : > { %v1792_v2 = vpop.f32.mrb[15].mxu1  ;;  %v1103_v3 = vadd.f32 %v1680_v41, %v1102_v63 }
 0x39e   : > { %v1104_v4 = vsel %vm712_vm3, %v1103_v3, -inf }
 0x39f   : > { %1105 = vmax.xlane.f32.xlu1 %v1104_v4 }
 0x414   : > { %v769_v5 = vpop.xlane.xlu1 %768 }
 0x415   : > { %v770_v6 = vsub.f32 %v766_v46, %v769_v5 }
 0x417   : > { %v771_v7 = vmul.f32 1.442695, %v770_v6 }
 0x419   : > { %1895 = vpow2.f32 %v771_v7 }
 0x41c   : > { %v882_v8 = vpop.xlane.xlu0 %881 }
 0x41d   : > { %v883_v9 = vsub.f32 %v879_v53, %v882_v8 }
 0x41f   : > { %v884_v10 = vmul.f32 1.442695, %v883_v9 }
 0x421   : > { %1897 = vpow2.f32 %v884_v10 }
 0x423   : > { %v1896_v11 = vpop.eup %1895 }
 0x424   : > { %v994_v12 = vpop.xlane.xlu0 %993  ;;  %v773_v13 = vsel %vm712_vm3, %v1896_v11, 0.0 }
 0x425   : > { %v995_v14 = vsub.f32 %v991_v60, %v994_v12  ;;  %774 = vadd.xlane.f32.xlu0 %v773_v13  ;;  %v1888_v60 = vld [vmem:[%s2109_s2 + $0x8] sm:$0xff]   ;;  %v1688_v12 = vld [vmem:[%s2130_s14] ss:$0 sm:$0xff] }
 0x426   : > { %1802 = vmatpush3.bf16.msra.mxu1 %v1888_v60 }
 0x427   : > { %v996_v15 = vmul.f32 1.442695, %v995_v14  ;;  %1815 = vmatprep.subr.bf16.mxu1 %v1961_v18 }
 0x429   : > { %1899 = vpow2.f32 %v996_v15 }
 0x42b   : > { %v1898_v16 = vpop.eup %1897 }
 0x42c   : > { %v886_v17 = vsel %vm712_vm3, %v1898_v16, 0.0  ;;  %v1106_v22 = vpop.xlane.xlu1 %1105 }
 0x42d   : > { %887 = vadd.xlane.f32.xlu1 %v886_v17  ;;  %v1107_v23 = vsub.f32 %v1103_v3, %v1106_v22 }
 0x42f   : > { %v1108_v24 = vmul.f32 1.442695, %v1107_v23 }
 0x431   : > { %1901 = vpow2.f32 %v1108_v24 }
 0x433   : > { %v1900_v19 = vpop.eup %1899 }
 0x434   : > { %v998_v21 = vsel %vm712_vm3, %v1900_v19, 0.0 }
 0x435   : > { %999 = vadd.xlane.f32.xlu0 %v998_v21 }
 0x43b   : > { %v1902_v25 = vpop.eup %1901 }
 0x43c   : > { %v1110_v26 = vsel %vm712_vm3, %v1902_v25, 0.0 }
 0x43e   : > { %892 = vrot.lane.b32.xlu1 %v2174_v27, %s1970_s12 }
 0x44b   : > { %779 = vrot.lane.b32.xlu0 %v2174_v27, %s1971_s11 }
 0x44f   : > { %1116 = vrot.lane.b32.xlu0 %v2174_v27, %s1972_s18 }
 0x462   : > { %1111 = vadd.xlane.f32.xlu1 %v1110_v26 }
 0x473   : > { %1004 = vrot.lane.b32.xlu1 %v2174_v27, %s1973_s24 }
 0x4b2   : > { %v775_v28 = vpop.xlane.xlu0 %774 }
 0x4b3   : > { %1903 = vrcp.f32 %v775_v28  ;;  %v1889_v28 = vld [vmem:[%s2114_s21] sm:$0xff]  }
 0x4ba   : > { %v888_v29 = vpop.xlane.xlu1 %887 }
 0x4bb   : > { %1905 = vrcp.f32 %v888_v29  ;;  %v1890_v29 = vld [vmem:[%s2114_s21 + $0x8] sm:$0xff]  }
 0x4bd   : > { %v1904_v30 = vpop.eup %1903 }
 0x4be   : > { %v777_v32 = vmul.f32 %v1904_v30, %v1896_v11  ;;  %v893_v35 = vpop.permute.xlu1 %892 }
 0x4bf   : > { %v898_v38 = vsel %vm784_vm4, %v893_v35, 0  ;;  %v1693_v35 = vld [vmem:[%s2136_s19 + $0x1] ss:$0 sm:$0xff] }
 0x4c0   : > { %v778_v36 = vpack.c.bf16 %v777_v32, %v777_v32 }
 0x4c2   : > { %v1000_v31 = vpop.xlane.xlu0 %999 }
 0x4c3   : > { %1907 = vrcp.f32 %v1000_v31 }
 0x4c5   : > { %v1906_v37 = vpop.eup %1905 }
 0x4c6   : > { %v780_v33 = vpop.permute.xlu0 %779  ;;  %v890_v27 = vmul.f32 %v1906_v37, %v1898_v16 }
 0x4c7   : > { %v786_v34 = vsel %vm784_vm4, %v780_v33, 0  ;;  %v1692_v33 = vld [vmem:[%s2136_s19] ss:$0 sm:$0xff] }
 0x4c8   : > { %1758 = vmatpush3.bf16.msra.mxu0 %v786_v34  ;;  %v891_v39 = vpack.c.bf16 %v890_v27, %v890_v27  ;;  %v1891_v27 = vld [vmem:[%s2124_s30] sm:$0xff]  }
 0x4c9   : > { %1769 = vmatprep.subr.bf16.mxu0 %v1961_v18 }
 0x4ca   : > { %v1117_v45 = vpop.permute.xlu0 %1116 }
 0x4cb   : > { %1760 = vmatmul.mubr.msk.bf16.vlgmr.msra.gmra.mrb[4].mxu0 %vm712_vm3, %v778_v36  ;;  %v1122_v47 = vsel %vm784_vm4, %v1117_v45, 0 }
 0x4cc   : > { %1770 = vmatpush3.bf16.msra.mxu0 %v898_v38  ;;  %1771 = vmatprep.mubr.msk.bf16.mxu0 %vm1962_vm1, %v1961_v18 }
 0x4cd   : > { %1781 = vmatprep.subr.bf16.mxu0 %v1961_v18  ;;  %v1908_v40 = vpop.eup %1907 }
 0x4ce   : > { %v1002_v42 = vmul.f32 %v1908_v40, %v1900_v19  ;;  %v1893_v40 = vld [vmem:[%s2124_s30 + $0x10] sm:$0xff]  }
 0x4d0   : > { %v1003_v46 = vpack.c.bf16 %v1002_v42, %v1002_v42  ;;  %v1694_v42 = vld [vmem:[%s2343_s3] ss:$0 sm:$0xff] }
 0x4d3   : > { %1772 = vmatmul.mubr.msk.bf16.vlgmr.msra.gmra.mrb[8].mxu0 %vm712_vm3, %v891_v39  ;;  %v1892_v39 = vld [vmem:[%s2124_s30 + $0x8] sm:$0xff]  }
 0x4d4   : > { %1783 = vmatprep.mubr.msk.bf16.mxu0 %vm1962_vm1, %v1961_v18 }
 0x4ef   : > { %v1112_v41 = vpop.xlane.xlu1 %1111 }
 0x4f0   : > { %1909 = vrcp.f32 %v1112_v41  ;;  %v1894_v41 = vld [vmem:[%s2124_s30 + $0x18] sm:$0xff]   ;;  %s2344_s30 = sld [smem:[#allocation12_spill]] (!%p1706_p8) }
 0x4f3   : > { %v1005_v43 = vpop.permute.xlu1 %1004 }
 0x4f4   : > { %v1010_v44 = vsel %vm784_vm4, %v1005_v43, 0 }
 0x4f5   : > { %1782 = vmatpush3.bf16.msra.mxu0 %v1010_v44 }
 0x4f6   : > { %1793 = vmatprep.subr.bf16.mxu0 %v1961_v18 }
 0x4f8   : > { %1784 = vmatmul.mubr.msk.bf16.vlgmr.msra.gmra.mrb[12].mxu0 %vm712_vm3, %v1003_v46 }
 0x4f9   : > { %1794 = vmatpush3.bf16.msra.mxu0 %v1122_v47  ;;  %1795 = vmatprep.mubr.msk.bf16.mxu0 %vm1962_vm1, %v1961_v18 }
 0x4fa   : > { %v1910_v48 = vpop.eup %1909  ;;  %1807 = vmatprep.subr.bf16.mxu0 %v1961_v18 }
 0x4fb   : > { %v1114_v49 = vmul.f32 %v1910_v48, %v1902_v25 }
 0x4fd   : > { %v1115_v50 = vpack.c.bf16 %v1114_v49, %v1114_v49 }
 0x500   : > { %1796 = vmatmul.mubr.msk.bf16.vlgmr.msra.gmra.mrb[16].mxu0 %vm712_vm3, %v1115_v50 }
 0x501   : > { %1811 = vmatprep.mubr.msk.bf16.mxu0 %vm1962_vm1, %v1961_v18  ;;  %1808 = vmatpush3.bf16.msra.mxu0 %v1889_v28 }
 0x502   : > { %1809 = vmatprep.subr.bf16.mxu0 %v1961_v18 }
 0x505   : > { %1810 = vmatpush3.bf16.msra.mxu0 %v1890_v29 }
 0x59e   : > { %v822_v51 = vpop.f32.mrb[4].mxu0 }
 0x59f   : > { %v1761_v52 = vpop.f32.mrb[5].mxu0 }
 0x5a0   : > { %v825_v53 = vpop.f32.mrb[6].mxu0 }
 0x5a1   : > { %v1762_v54 = vpop.f32.mrb[7].mxu0 }
 0x5a6   : > { %v934_v55 = vpop.f32.mrb[8].mxu0 }
 0x5a7   : > { %1165 = vrot.lane.b32.xlu1 %v934_v55, %s1974_s17  ;;  %v1773_v56 = vpop.f32.mrb[9].mxu0 }
 0x5a8   : > { %v937_v57 = vpop.f32.mrb[10].mxu0 }
 0x5a9   : > { %v1774_v58 = vpop.f32.mrb[11].mxu0  ;;  %v1698_v57 = vld [vmem:[%s2130_s14 + $0x1] ss:$0 sm:$0xff] }
 0x5cb   : > { %v1046_v61 = vpop.f32.mrb[12].mxu0 }
 0x5cc   : > { %1169 = vrot.lane.b32.xlu0 %v1046_v61, %s1975_s22  ;;  %v1785_v62 = vpop.f32.mrb[13].mxu0 }
 0x5cd   : > { %v1049_v63 = vpop.f32.mrb[14].mxu0 }
 0x5ce   : > { %v1786_v0 = vpop.f32.mrb[15].mxu0 }
 0x5d3   : > { %v1158_v1 = vpop.f32.mrb[16].mxu0 }
 0x5d4   : > { %1173 = vrot.lane.b32.xlu1 %v1158_v1, %s1976_s0  ;;  %v1797_v2 = vpop.f32.mrb[17].mxu0 }
 0x5d5   : > { %v1161_v3 = vpop.f32.mrb[18].mxu0 }
 0x5d6   : > { %v1798_v4 = vpop.f32.mrb[19].mxu0 }
 0x619   : > { %v1166_v5 = vpop.permute.xlu1 %1165 }
 0x61a   : > { %v1176_v7 = vsel %vm712_vm3, %v822_v51, %v1166_v5 }
 0x63e   : > { %v1170_v6 = vpop.permute.xlu0 %1169 }
 0x63f   : > { %v1178_v8 = vsel %vm1177_vm5, %v1176_v7, %v1170_v6 }
 0x646   : > { %v1174_v9 = vpop.permute.xlu1 %1173 }
 0x647   : > { %v1180_v10 = vsel %vm1179_vm6, %v1178_v8, %v1174_v9 }
 0x648   : > { %v1181_v11 = vpack.c.bf16 %v1180_v10, %v1180_v10  ;;  %v1704_v10 = vld [vmem:[%s2136_s19 + $0x2] ss:$0 sm:$0xff] }
 0x64a   : > { %1804 = vmatmul.mubr.msk.bf16.vlgmr.msra.gmra.mrb[16].mxu1 %vm663_vm2, %v1181_v11 }
 0x64b   : > { %1823 = vmatprep.mubr.msk.bf16.mxu1 %vm1962_vm1, %v1961_v18  ;;  %1816 = vmatpush3.bf16.msra.mxu1 %v1891_v27 }
 0x64c   : > { %1817 = vmatprep.subr.bf16.mxu1 %v1961_v18 }
 0x64f   : > { %1818 = vmatpush3.bf16.msra.mxu1 %v1892_v39 }
 0x650   : > { %1819 = vmatprep.subr.bf16.mxu1 %v1961_v18 }
 0x653   : > { %1820 = vmatpush3.bf16.msra.mxu1 %v1893_v40 }
 0x654   : > { %1821 = vmatprep.subr.bf16.mxu1 %v1961_v18 }
 0x657   : > { %1822 = vmatpush3.bf16.msra.mxu1 %v1894_v41 }
 0x71d   : > { %v1240_v13 = vpop.f32.mrb[16].mxu1 }
 0x71e   : > { %v1241_v14 = vadd.f32 %v1688_v12, %v1240_v13  ;;  %v1805_v15 = vpop.f32.mrb[17].mxu1  ;;  %v1705_v12 = vld [vmem:[%s2136_s19 + $0x3] ss:$0 sm:$0xff]  ;;  %s2345_s19 = smov (!%p1706_p8), %s2344_s30 }
 0x71f   : > { %v1243_v16 = vpop.f32.mrb[18].mxu1  ;;  %v1489_v39 = vld [vmem:[%s2345_s19 + $0x2] sm:$0x1] (!%p1706_p8) }
 0x720   : > { %v1806_v17 = vpop.f32.mrb[19].mxu1  ;;  %v1246_v19 = vadd.f32 %v1241_v14, %v2158_v20 }
 0x722   : > { %v1249_v21 = vsel %vm663_vm2, %v1246_v19, 0.0 }
 0x723   : > { %1250 = vadd.xlane.f32.xlu0 %v1249_v21 }
 0x7b0   : > { %v1251_v22 = vpop.xlane.xlu0 %1250 }
 0x7b1   : > { %v1253_v23 = vmul.f32 0.03125, %v1251_v22 }
 0x7b3   : > { %v1254_v24 = vsub.f32 %v1246_v19, %v1253_v23 }
 0x7b5   : > { %v1255_v25 = vmul.f32 %v1254_v24, %v1254_v24 }
 0x7b7   : > { %v1256_v26 = vsel %vm663_vm2, %v1255_v25, 0.0 }
 0x7b8   : > { %1257 = vadd.xlane.f32.xlu1 %v1256_v26 }
 0x845   : > { %v1258_v20 = vpop.xlane.xlu1 %1257 }
 0x846   : > { %v1259_v30 = vmul.f32 0.03125, %v1258_v20 }
 0x848   : > { %v1260_v31 = vadd.f32 1e-05, %v1259_v30 }
 0x84a   : > { %1911 = vrsqrt.f32 %v1260_v31 }
 0x854   : > { %v1912_v32 = vpop.eup %1911 }
 0x855   : > { %v1262_v34 = vmul.f32 %v1912_v32, %v1254_v24 }
 0x857   : > { %v1267_v36 = vmul.f32 %v1692_v33, %v1262_v34 }
 0x859   : > { %v1272_v37 = vadd.f32 %v1693_v35, %v1267_v36  ;;  %v1484_v35 = vld [vmem:[%s2344_s30] sm:$0x1] (!%p1706_p8) }
 0x85b   : > { %v1273_v38 = vpack.c.bf16 %v1272_v37, %v1272_v37 }
 0x85d   : > { %1812 = vmatmul.mubr.msk.bf16.vlgmr.msra.gmra.mrb[20].mxu0 %vm663_vm2, %v1273_v38 }
 0x930   : > { %v1334_v43 = vpop.f32.mrb[20].mxu0 }
 0x931   : > { %v1335_v44 = vadd.f32 %v1694_v42, %v1334_v43  ;;  %v1813_v45 = vpop.f32.mrb[21].mxu0  ;;  %v1495_v43 = vld [vmem:[#allocation3] sm:$0x1] (!%p1706_p8) }
 0x932   : > { %v1337_v46 = vpop.f32.mrb[22].mxu0 }
 0x933   : > { %v1340_v47 = vmul.f32 %v1335_v44, %v1335_v44  ;;  %v1814_v48 = vpop.f32.mrb[23].mxu0 }
 0x935   : > { %v1341_v49 = vmul.f32 %v1340_v47, %v1335_v44 }
 0x937   : > { %v1342_v50 = vmul.f32 0.044715, %v1341_v49 }
 0x939   : > { %v1343_v51 = vadd.f32 %v1342_v50, %v1335_v44 }
 0x93b   : > { %v1344_v52 = vmul.f32 0.7978846, %v1343_v51 }
 0x93d   : > { %1913 = vtanh.f32 %v1344_v52 }
 0x947   : > { %v1914_v18 = vpop.eup %1913 }
 0x948   : > { %v1346_v53 = vadd.f32 1.0, %v1914_v18 }
 0x94a   : > { %v1347_v54 = vmul.f32 0.5, %v1346_v53 }
 0x94c   : > { %v1348_v55 = vmul.f32 %v1347_v54, %v1335_v44 }
 0x94e   : > { %v1349_v56 = vpack.c.bf16 %v1348_v55, %v1348_v55 }
 0x950   : > { %1824 = vmatmul.mubr.msk.bf16.vlgmr.msra.gmra.mrb[20].mxu1 %vm1387_vm7, %v1349_v56 }
 0xa23   : > { %v1425_v58 = vpop.f32.mrb[20].mxu1 }
 0xa24   : > { %v1426_v59 = vadd.f32 %v1698_v57, %v1425_v58  ;;  %v1825_v60 = vpop.f32.mrb[21].mxu1 }
 0xa25   : > { %v1428_v61 = vpop.f32.mrb[22].mxu1 }
 0xa26   : > { %v1826_v62 = vpop.f32.mrb[23].mxu1  ;;  %v1431_v63 = vadd.f32 %v1426_v59, %v1272_v37  ;;  %v1486_v37 = vld [vmem:[%s2345_s19 + $0x1] sm:$0x1] (!%p1706_p8) }
 0xa28   : > { %v1434_v0 = vsel %vm663_vm2, %v1431_v63, 0.0 }
 0xa29   : > { %1435 = vadd.xlane.f32.xlu0 %v1434_v0 }
 0xab6   : > { %v1436_v1 = vpop.xlane.xlu0 %1435 }
 0xab7   : > { %v1437_v2 = vmul.f32 0.03125, %v1436_v1 }
 0xab9   : > { %v1438_v3 = vsub.f32 %v1431_v63, %v1437_v2 }
 0xabb   : > { %v1439_v4 = vmul.f32 %v1438_v3, %v1438_v3 }
 0xabd   : > { %v1440_v5 = vsel %vm663_vm2, %v1439_v4, 0.0 }
 0xabe   : > { %1441 = vadd.xlane.f32.xlu0 %v1440_v5 }
 0xb4b   : > { %v1442_v6 = vpop.xlane.xlu0 %1441 }
 0xb4c   : > { %v1443_v7 = vmul.f32 0.03125, %v1442_v6 }
 0xb4e   : > { %v1444_v8 = vadd.f32 1e-05, %v1443_v7 }
 0xb50   : > { %1915 = vrsqrt.f32 %v1444_v8 }
 0xb5a   : > { %v1916_v9 = vpop.eup %1915 }
 0xb5b   : > { %v1446_v11 = vmul.f32 %v1916_v9, %v1438_v3  ;;  %1461 = sbr.rel (%p1706_p8) target bundleno = 3257 (0xcb9), region = 80 }
 0xb5d   : > { %v1451_v13 = vmul.f32 %v1704_v10, %v1446_v11 }
 0xb5f   : > { %v1456_v14 = vadd.f32 %v1705_v12, %v1451_v13 }
 0xb61   : > { %1457 = vst.msk [vmem:[#allocation2] sm:$0xff] %vm663_vm2, %v1456_v14  ;;  %v1462_v15 = vsel (!%p1706_p8), %vm663_vm2, %v1456_v14, 0.0 }
 0xb62   : > { %v1463_v16 = vrot.slane %v1462_v15, 4 }
 0xb64   : > { %v1464_v17 = vadd.f32 %v1463_v16, %v1462_v15 }
 0xb66   : > { %v1465_v19 = vrot.slane %v1464_v17, 2 }
 0xb68   : > { %v1466_v21 = vadd.f32 %v1465_v19, %v1464_v17 }
 0xb6a   : > { %v1467_v22 = vrot.slane %v1466_v21, 1 }
 0xb6c   : > { %v1468_v23 = vadd.f32 %v1467_v22, %v1466_v21 }
 0xb6e   : > { %v1469_v24 = vmul.f32 0.125, %v1468_v23 }
 0xb70   : > { %v1470_v25 = vmul.f32 %v1469_v24, %v1469_v24 }
 0xb72   : > { %v1471_v26 = vsel %vm663_vm2, %v1470_v25, 0.0 }
 0xb73   : > { %1472 = vadd.xlane.f32.xlu0 %v1471_v26 }
 0xc00   : > { %v1473_v28 = vpop.xlane.xlu0 %1472 }
 0xc01   : > { %1917 = vrsqrt.f32 %v1473_v28  ;;  %vm1476_vm8 = vcmp.eq.f32.partialorder %v1473_v28, inf  ;;  %v1479_v30 = vand.u32 2147483648, %v1473_v28  ;;  %vm1478_vm9 = vcmp.eq.f32.partialorder %v1473_v28, 0.0 }
 0xc0b   : > { %v1918_v29 = vpop.eup %1917 }
 0xc0c   : > { %v1475_v20 = vmul.f32 %v1918_v29, %v1473_v28 }
 0xc0e   : > { %v1477_v31 = vsel %vm1476_vm8, %v1473_v28, %v1475_v20 }
 0xc0f   : > { %v1480_v32 = vsel %vm1478_vm9, %v1479_v30, %v1477_v31 }
 0xc10   : > { %v1481_v33 = vmax.f32 %v1480_v32, 1e-12 }
 0xc12   : > { %1919 = vrcp.f32 %v1481_v33 }
 0xc1c   : > { %v1920_v34 = vpop.eup %1919 }
 0xc1d   : > { %v1483_v36 = vmul.f32 %v1920_v34, %v1469_v24 }
 0xc1f   : > { %v1485_v38 = vmul.f32 %v1484_v35, %v1483_v36 }
 0xc21   : > { %v1487_v27 = vadd.f32 %v1486_v37, %v1485_v38 }
 0xc23   : > { %v1488_v40 = vmax.f32 %v1487_v27, 0.0 }
 0xc25   : > { %v1490_v41 = vmul.f32 %v1489_v39, %v1488_v40 }
 0xc27   : > { %v1492_v42 = vsel %vm1491_vm10, %v1490_v41, 0.0 }
 0xc28   : > { %1493 = vadd.xlane.f32.xlu0 %v1492_v42 }
 0xcb5   : > { %v1494_v44 = vpop.xlane.xlu0 %1493 }
 0xcb6   : > { %v1496_v45 = vadd.f32 %v1495_v43, %v1494_v44 }
 0xcb8   : > { %1498 = vst.msk [vmem:[%s603_s25] sm:$0x1] %vm1497_vm11, %v1496_v45 }
 0xcb9 PF: > { %s2346_s11 = sld [smem:[#allocation6_spill]]  ;;  %s2347_s27 = sld [smem:[#allocation4_spill]] }
 0xcba   : > { %s2348_s28 = sld [smem:[#allocation5_spill]]  ;;  %s2349_s29 = sld [smem:[#allocation7_spill]] }
 0xcbb   : > { %s2350_s30 = sld [smem:[#allocation8_spill]] }
 0xcbf   : > { %s25_s14 = sadd.s32 1, %s2346_s11  }
 0xcc0   : > { %p22_p9 = scmp.ge.s32.totalorder %s25_s14, 6  }
 0xcc2   :  { %24 = sbr.rel (!%p22_p9) target bundleno = 5 (0x5), region = 137 }

</bundles_post_ra>
